<compile_context>
chip_gen: v7x
topology: tpu7x:2x2x1
jax: 0.10.0
libtpu: 0.0.40
codegen_flags: <defaults>
</compile_context>

<pallas_src>
import functools

import jax
import jax.numpy as jnp
import numpy as np
from jax.experimental import pallas as pl
from jax.experimental.pallas import tpu as pltpu

HIDDEN = 32  # hidden size H


def _reducer_kernel(x_ref, w_ref, b_ref, out_ref):
    """One batch tile of the reduce cell.

    x_ref   : (TILE_B, 4H)  packed [h1 | c1 | h2 | c2]   (128 lanes)
    w_ref   : (4H, 5H)      zero-extended, gate-permuted proj weight
    b_ref   : (1, 5H)       gate-permuted proj bias
    out_ref : (TILE_B, 2H)  [h | c]
    """
    H = out_ref.shape[-1] // 2

    x = x_ref[...]                      # (TILE_B, 4H)
    c1 = x[:, H:2 * H]
    c2 = x[:, 3 * H:4 * H]

    # (TILE_B, 4H) @ (4H, 5H) + (1, 5H) -> (TILE_B, 5H); c1/c2 rows of W are 0.
    z = jnp.dot(x, w_ref[...], preferred_element_type=jnp.float32) + b_ref[...]

    # Gate layout along lanes (permuted): [ i | f1 | f2 | o | a ].
    # One lane-dense sigmoid over lanes 0..4H-1 (exactly one vreg column tile),
    # one tanh on the a-slab in the 4H..5H tail.
    s = jax.nn.sigmoid(z[:, :4 * H])    # (TILE_B, 4H)
    a_t = jnp.tanh(z[:, 4 * H:])        # (TILE_B, H)

    i_g = s[:, 0 * H:1 * H]
    f1_g = s[:, 1 * H:2 * H]
    f2_g = s[:, 2 * H:3 * H]
    o_g = s[:, 3 * H:4 * H]

    c = a_t * i_g + f1_g * c1 + f2_g * c2
    h = o_g * jnp.tanh(c)

    out_ref[...] = jnp.concatenate([h, c], axis=-1).astype(out_ref.dtype)


def prepare_params(weight, bias):
    """One-time parameter re-layout (hoisted out of the per-call path).

    weight: (5H, 2H) torch nn.Linear layout.
    bias  : (5H,).

    Returns:
      w_ext   : (4H, 5H) -- transposed, gate columns permuted to [i|f1|f2|o|a],
                rows zero-extended to match the packed [h1|c1|h2|c2] input.
      bias_row: (1, 5H)  -- gate-permuted bias.
    """
    H = weight.shape[1] // 2
    wt = weight.T                                            # (2H, 5H), gates [a|i|f1|f2|o]
    wt = jnp.concatenate([wt[:, H:], wt[:, :H]], axis=-1)    # gates -> [i|f1|f2|o|a]
    b_row = jnp.concatenate([bias[H:], bias[:H]])[None, :]   # (1, 5H), same permutation
    zeros = jnp.zeros((H, wt.shape[-1]), wt.dtype)
    # packed LHS is [h1|c1|h2|c2] -> rows: [W_h1 ; 0 ; W_h2 ; 0]
    w_ext = jnp.concatenate([wt[:H], zeros, wt[H:], zeros], axis=0)  # (4H, 5H)
    return w_ext, b_row


def _round_up(n, m):
    return ((n + m - 1) // m) * m


@functools.partial(jax.jit, static_argnames=("tile_b",))
def reducer_batched(left, right, w_ext, bias_row, *, tile_b=512):
    """Batched reduce cell over B tree nodes.

    left, right: (B, 2H) f32; w_ext: (4H, 5H); bias_row: (1, 5H).
    Returns (B, 2H) = cat([h, c], -1) per row.
    """
    B, twoH = left.shape
    H = twoH // 2

    # Pack the two 64-lane inputs into one lane-dense (B, 4H)=(B, 128) operand.
    packed = jnp.concatenate([left, right], axis=-1)          # [h1|c1|h2|c2]

    # Tile selection: as few grid steps as possible (mem/overhead-bound kernel),
    # but keep >= 2 steps when it would collapse to 1 so v7x's two TensorCores
    # both get work. Sublane granularity for f32 is 8.
    Bp8 = _round_up(B, 8)
    tb = _round_up(min(tile_b, Bp8), 8)
    if tb >= Bp8 and Bp8 >= 16:
        tb = _round_up(pl.cdiv(Bp8, 2), 8)
    grid = (pl.cdiv(B, tb),)

    # No jnp.pad: Pallas masks the ragged tail block (OOB reads are per-row
    # garbage that never reaches valid rows; OOB writes are dropped).
    out = pl.pallas_call(
        _reducer_kernel,
        out_shape=jax.ShapeDtypeStruct((B, twoH), jnp.float32),
        grid=grid,
        in_specs=[
            pl.BlockSpec((tb, 4 * H), lambda b: (b, 0)),       # packed inputs
            pl.BlockSpec((4 * H, 5 * H), lambda b: (0, 0)),    # weight (resident)
            pl.BlockSpec((1, 5 * H), lambda b: (0, 0)),        # bias   (resident)
        ],
        out_specs=pl.BlockSpec((tb, twoH), lambda b: (b, 0)),
        compiler_params=pltpu.CompilerParams(
            dimension_semantics=("parallel",)),                # both TCs on v7x
    )(packed, w_ext, bias_row)
    return out


@jax.jit
def reducer_reference(left, right, weight, bias):
    """Pure-JAX reference mirroring the PyTorch forward (works batched or not)."""
    H = left.shape[-1] // 2
    h1, c1 = left[..., :H], left[..., H:]
    h2, c2 = right[..., :H], right[..., H:]
    z = jnp.concatenate([h1, h2], axis=-1) @ weight.T + bias
    a, i, f1, f2, o = jnp.split(z, 5, axis=-1)
    c = (jnp.tanh(a) * jax.nn.sigmoid(i)
         + jax.nn.sigmoid(f1) * c1 + jax.nn.sigmoid(f2) * c2)
    h = jax.nn.sigmoid(o) * jnp.tanh(c)
    return jnp.concatenate([h, c], axis=-1)


def reducer_forward(left, right, weight, bias):
    """Single-node forward matching the original PyTorch module signature.

    Per the perf review: a Pallas launch for one (padded) row is ~100% fixed
    overhead, so B=1 goes through plain XLA; batch whole tree levels through
    reducer_batched instead.
    """
    return reducer_reference(left, right, weight, bias)


if __name__ == "__main__":
    H = HIDDEN
    B = 200  # batch of tree nodes reduced together (not a tile multiple on purpose)

    key = jax.random.PRNGKey(0)
    k_left, k_right, k_w, k_b = jax.random.split(key, 4)

    # torch nn.Linear(2H, 5H) shaped parameters.
    weight = jax.random.normal(k_w, (5 * H, 2 * H), dtype=jnp.float32) * 0.1
    bias = jax.random.normal(k_b, (5 * H,), dtype=jnp.float32) * 0.1

    # Inputs: [h, c] stacked vectors, batched over B nodes.
    left = jax.random.normal(k_left, (B, 2 * H), dtype=jnp.float32)
    right = jax.random.normal(k_right, (B, 2 * H), dtype=jnp.float32)

    # One-time parameter re-layout (hoisted out of the per-call path).
    w_ext, bias_row = prepare_params(weight, bias)

    # Batched kernel vs. reference.
    out = jax.block_until_ready(reducer_batched(left, right, w_ext, bias_row))
    ref = reducer_reference(left, right, weight, bias)
    np.testing.assert_allclose(np.asarray(out), np.asarray(ref),
                               rtol=1e-5, atol=1e-5)

    # Single-node call matching the original module forward semantics.
    out1 = jax.block_until_ready(reducer_forward(left[0], right[0], weight, bias))
    np.testing.assert_allclose(np.asarray(out1), np.asarray(ref[0]),
                               rtol=1e-5, atol=1e-5)

    print("KERNEL_OK")
</pallas_src>

<mosaic_0001>
module attributes {stable_mosaic.version = 11 : i64} {
  func.func @_reducer_kernel(%arg0: i32, %arg1: memref<104x128xf32, #tpu.memory_space<vmem>>, %arg2: memref<128x160xf32, #tpu.memory_space<vmem>>, %arg3: memref<1x160xf32, #tpu.memory_space<vmem>>, %arg4: memref<104x64xf32, #tpu.memory_space<vmem>>) attributes {dimension_semantics = [#tpu.dimension_semantics<parallel>], iteration_bounds = array<i64: 2>, scalar_prefetch = 0 : i64, scratch_operands = 0 : i64, tpu.core_type = #tpu.core_type<tc>, window_params = [{transform_indices = @transform_0, window_bounds = array<i64: 104, 128>}, {pipeline_mode = #tpu.pipeline_mode<synchronous>, transform_indices = @transform_1, window_bounds = array<i64: 128, 160>}, {pipeline_mode = #tpu.pipeline_mode<synchronous>, transform_indices = @transform_2, window_bounds = array<i64: 1, 160>}, {transform_indices = @transform_3, window_bounds = array<i64: 104, 64>}]} {
    %c0 = arith.constant 0 : index
    %c0_0 = arith.constant 0 : index
    %0 = vector.load %arg1[%c0, %c0_0] : memref<104x128xf32, #tpu.memory_space<vmem>>, vector<104x128xf32>
    %1 = vector.extract_strided_slice %0 {offsets = [0, 32], sizes = [104, 32], strides = [1, 1]} : vector<104x128xf32> to vector<104x32xf32>
    %2 = vector.extract_strided_slice %0 {offsets = [0, 96], sizes = [104, 32], strides = [1, 1]} : vector<104x128xf32> to vector<104x32xf32>
    %c0_1 = arith.constant 0 : index
    %c0_2 = arith.constant 0 : index
    %3 = vector.load %arg2[%c0_1, %c0_2] : memref<128x160xf32, #tpu.memory_space<vmem>>, vector<128x160xf32>
    %cst = arith.constant dense<0.000000e+00> : vector<104x160xf32>
    %4 = tpu.matmul %0, %3, %cst {dimension_numbers = #tpu.dot_dimension_numbers<[1], [0], [0], [1], [0, 0, 1, 1], [], []>} : vector<104x128xf32>, vector<128x160xf32>, vector<104x160xf32> -> vector<104x160xf32>
    %c0_3 = arith.constant 0 : index
    %c0_4 = arith.constant 0 : index
    %5 = vector.load %arg3[%c0_3, %c0_4] : memref<1x160xf32, #tpu.memory_space<vmem>>, vector<1x160xf32>
    %6 = vector.broadcast %5 : vector<1x160xf32> to vector<104x160xf32>
    %7 = arith.addf %4, %6 : vector<104x160xf32>
    %8 = vector.extract_strided_slice %7 {offsets = [0, 0], sizes = [104, 128], strides = [1, 1]} : vector<104x160xf32> to vector<104x128xf32>
    %9 = arith.negf %8 : vector<104x128xf32>
    %10 = math.exp %9 : vector<104x128xf32>
    %cst_5 = arith.constant 1.000000e+00 : f32
    %11 = vector.broadcast %cst_5 : f32 to vector<104x128xf32>
    %12 = arith.addf %11, %10 : vector<104x128xf32>
    %13 = arith.divf %11, %12 : vector<104x128xf32>
    %14 = vector.extract_strided_slice %7 {offsets = [0, 128], sizes = [104, 32], strides = [1, 1]} : vector<104x160xf32> to vector<104x32xf32>
    %15 = math.tanh %14 : vector<104x32xf32>
    %16 = vector.extract_strided_slice %13 {offsets = [0, 0], sizes = [104, 32], strides = [1, 1]} : vector<104x128xf32> to vector<104x32xf32>
    %17 = vector.extract_strided_slice %13 {offsets = [0, 32], sizes = [104, 32], strides = [1, 1]} : vector<104x128xf32> to vector<104x32xf32>
    %18 = vector.extract_strided_slice %13 {offsets = [0, 64], sizes = [104, 32], strides = [1, 1]} : vector<104x128xf32> to vector<104x32xf32>
    %19 = vector.extract_strided_slice %13 {offsets = [0, 96], sizes = [104, 32], strides = [1, 1]} : vector<104x128xf32> to vector<104x32xf32>
    %20 = arith.mulf %15, %16 : vector<104x32xf32>
    %21 = arith.mulf %17, %1 : vector<104x32xf32>
    %22 = arith.addf %20, %21 : vector<104x32xf32>
    %23 = arith.mulf %18, %2 : vector<104x32xf32>
    %24 = arith.addf %22, %23 : vector<104x32xf32>
    %25 = math.tanh %24 : vector<104x32xf32>
    %26 = arith.mulf %19, %25 : vector<104x32xf32>
    %27 = tpu.concatenate %26, %24 in 1 : vector<104x32xf32>, vector<104x32xf32> -> vector<104x64xf32>
    %c0_6 = arith.constant 0 : index
    %c0_7 = arith.constant 0 : index
    %28 = vector.load %arg4[%c0_6, %c0_7] : memref<104x64xf32, #tpu.memory_space<vmem>>, vector<104x64xf32>
    tpu.vector_store %arg4[%c0_6, %c0_7], %27 {strides = array<i32>} : memref<104x64xf32, #tpu.memory_space<vmem>>, vector<104x64xf32>,
    return
  }
  func.func @transform_0(%arg0: i32) -> (i32, i32) {
    %c0_i32 = arith.constant 0 : i32
    %c0_i32_0 = arith.constant 0 : i32
    return %arg0, %c0_i32 : i32, i32
  }
  func.func @transform_1(%arg0: i32) -> (i32, i32) {
    %c0_i32 = arith.constant 0 : i32
    %c0_i32_0 = arith.constant 0 : i32
    %c0_i32_1 = arith.constant 0 : i32
    return %c0_i32, %c0_i32_0 : i32, i32
  }
  func.func @transform_2(%arg0: i32) -> (i32, i32) {
    %c0_i32 = arith.constant 0 : i32
    %c0_i32_0 = arith.constant 0 : i32
    %c0_i32_1 = arith.constant 0 : i32
    return %c0_i32, %c0_i32_0 : i32, i32
  }
  func.func @transform_3(%arg0: i32) -> (i32, i32) {
    %c0_i32 = arith.constant 0 : i32
    %c0_i32_0 = arith.constant 0 : i32
    return %arg0, %c0_i32 : i32, i32
  }
}

</mosaic_0001>

<bundles_post_ra>
// kernel: reducer_batched.1
= control target key start
LH: loop header
LB: loop body
LE: loop exit
PB: predicated region body
PF: predicated region fallthrough
CT: control target
= control target key end

     0   :  { %s1572_s12 = smov 0   ;;  %s1574_s13 = smov 0   ;;  %s2218_s0 = inlined_call_operand.vmem [shape: f32[200,128], index: 0, kind: input, shape index: {}]   ;;  %s2219_s1 = inlined_call_operand.vmem [shape: f32[128,160], index: 1, kind: input, shape index: {}]   ;;  %s2220_s2 = inlined_call_operand.vmem [shape: f32[1,160], index: 2, kind: input, shape index: {}]   ;;  %s2221_s3 = inlined_call_operand.vmem [shape: f32[200,64], index: 3, kind: output, shape index: {}]  }
   0x1   :  { %s1576_s14 = smov 0  }
   0x2 LB: > { %s1585_s15 = sadd.s32 4294967295, %s1514_s14   ;;  %s1587_s16 = sadd.s32 1, %s1514_s14   ;;  %s1514_s14 = sphi %s1576_s14, %s2228_s14   ;;  %s1510_s13 = sphi %s1574_s13, %s2227_s13   ;;  %s1506_s12 = sphi %s1572_s12, %s2226_s12  }
   0x3   : > { %s85_s17 = ssub.s32 %s1514_s14, %s1587_s16  ;;  %s88_s18 = sadd.s32 1, %s1510_s13 }
   0x4   : > { %p86_p0 = scmp.eq.s32.totalorder %s85_s17, 0  ;;  %p98_p1 = scmp.ne.s32.totalorder %s1510_s13, %s1506_s12 }
   0x5   : > { %p99_p2 = scmp.eq.s32.totalorder %s1585_s15, 1  ;;  %p1182_p3 = scmp.ge.s32.totalorder %s1514_s14, 1 }
   0x6   : > { %s1595_s19 = scalar_select %p86_p0, %s1510_s13, %s88_s18  }
   0x7   : > { %p1597_p4 = por %p99_p2, %p98_p1  ;;  %p146_p5 = scmp.lt.s32.totalorder %s1514_s14, 3 }
   0x9   : > { %p147_p6 = pnand %p1182_p3, %p146_p5 }
   0xa   : > { %v206_v0 = vld [vmem:[%s2219_s1 + $0x8] sm:$0xff] (!%p147_p6)  ;;  %v208_v1 = vld [vmem:[%s2219_s1 + $0x18] sm:$0xff] (!%p147_p6)  ;;  %v205_v2 = vld [vmem:[%s2219_s1] sm:$0xff] (!%p147_p6)  ;;  %s1611_s27 = smul.u32 (!%p147_p6), 13, %s1585_s15  ;;  %v1548_v7 = vmov (!%p147_p6), 0.0   ;;  %s1549_s22 = smov (!%p147_p6), 96   ;;  %v239_v62 = vlaneseq (!%p147_p6) }
   0xb   : > { %150 = sbr.rel (%p147_p6) target bundleno = 768 (0x300), region = 32  ;;  %v1210_v3 = vpack.c.bf16 (!%p147_p6), %v208_v1, %v206_v0  ;;  %v207_v4 = vld [vmem:[%s2219_s1 + $0x10] sm:$0xff] (!%p147_p6)  ;;  %v210_v5 = vld [vmem:[%s2219_s1 + $0x28] sm:$0xff] (!%p147_p6)  ;;  %v212_v6 = vld [vmem:[%s2219_s1 + $0x38] sm:$0xff] (!%p147_p6)  ;;  %313 = vmatprep.mubr.f32.mxu0 (!%p147_p6), %v1548_v7  ;;  %355 = vmatprep.mubr.f32.mxu1 (!%p147_p6), %v1548_v7  ;;  %s1550_s9 = smov (!%p147_p6), 64   ;;  %vm886_vm0 = vcmask (!%p147_p6), 261120  }
   0xc   : > { %v1212_v8 = vpack.c.bf16 (!%p147_p6), %v207_v4, %v205_v2  ;;  %v1214_v9 = vpack.c.bf16 (!%p147_p6), %v212_v6, %v210_v5  ;;  %v209_v10 = vld [vmem:[%s2219_s1 + $0x20] sm:$0xff] (!%p147_p6)  ;;  %v211_v11 = vld [vmem:[%s2219_s1 + $0x30] sm:$0xff] (!%p147_p6)  ;;  %v214_v12 = vld [vmem:[%s2219_s1 + $0x48] sm:$0xff] (!%p147_p6)  ;;  %p178_p7 = scmp.lt.s32.totalorder (!%p147_p6), %s1611_s27, 24  ;;  %v1798_v63 = vshrl.u32 (!%p147_p6), %v239_v62, 7  ;;  %s1551_s10 = smov (!%p147_p6), 32  }
   0xd   : > { %1211 = vmatprep.subr.bf16.mxu0 (!%p147_p6), %v1210_v3  ;;  %1242 = vmatprep.subr.bf16.mxu1 (!%p147_p6), %v1210_v3  ;;  %v216_v13 = vld [vmem:[%s2219_s1 + $0x58] sm:$0xff] (!%p147_p6)  ;;  %v1216_v14 = vpack.c.bf16 (!%p147_p6), %v211_v11, %v209_v10  ;;  %v213_v16 = vld [vmem:[%s2219_s1 + $0x40] sm:$0xff] (!%p147_p6)  ;;  %v215_v17 = vld [vmem:[%s2219_s1 + $0x50] sm:$0xff] (!%p147_p6)  ;;  %vm900_vm1 = vcmask (!%p147_p6), 523264  }
   0xe   : > { %1213 = vmatpush1.bf16.msra.mxu0 (!%p147_p6), %v1212_v8  ;;  %1250 = vmatpush1.bf16.msra.mxu1 (!%p147_p6), %v1212_v8  ;;  %v1218_v15 = vpack.c.bf16 (!%p147_p6), %v216_v13, %v214_v12  ;;  %v218_v18 = vld [vmem:[%s2219_s1 + $0x68] sm:$0xff] (!%p147_p6)  ;;  %v220_v19 = vld [vmem:[%s2219_s1 + $0x78] sm:$0xff] (!%p147_p6)  ;;  %v1220_v20 = vpack.c.bf16 (!%p147_p6), %v215_v17, %v213_v16  ;;  %v217_v22 = vld [vmem:[%s2219_s1 + $0x60] sm:$0xff] (!%p147_p6)  ;;  %v241_v0 = vsub.s32 (!%p147_p6), 0, %v1798_v63 }
   0xf   : > { %1215 = vmatprep.subr.bf16.mxu0 (!%p147_p6), %v1214_v9  ;;  %1243 = vmatprep.subr.bf16.mxu1 (!%p147_p6), %v1214_v9  ;;  %v1222_v21 = vpack.c.bf16 (!%p147_p6), %v220_v19, %v218_v18  ;;  %v219_v23 = vld [vmem:[%s2219_s1 + $0x70] sm:$0xff] (!%p147_p6)  ;;  %v222_v24 = vld [vmem:[%s2219_s1 + $0x88] sm:$0xff] (!%p147_p6)  ;;  %v224_v25 = vld [vmem:[%s2219_s1 + $0x98] sm:$0xff] (!%p147_p6) }
  0x10   : > { %v1224_v27 = vpack.c.bf16 (!%p147_p6), %v219_v23, %v217_v22  ;;  %v1226_v28 = vpack.c.bf16 (!%p147_p6), %v224_v25, %v222_v24  ;;  %v221_v29 = vld [vmem:[%s2219_s1 + $0x80] sm:$0xff] (!%p147_p6)  ;;  %v223_v30 = vld [vmem:[%s2219_s1 + $0x90] sm:$0xff] (!%p147_p6)  ;;  %v226_v32 = vld [vmem:[%s2219_s1 + $0xa8] sm:$0xff] (!%p147_p6) }
  0x11   : > { %v228_v33 = vld [vmem:[%s2219_s1 + $0xb8] sm:$0xff] (!%p147_p6)  ;;  %v1228_v35 = vpack.c.bf16 (!%p147_p6), %v223_v30, %v221_v29  ;;  %v225_v37 = vld [vmem:[%s2219_s1 + $0xa0] sm:$0xff] (!%p147_p6)  ;;  %v227_v38 = vld [vmem:[%s2219_s1 + $0xb0] sm:$0xff] (!%p147_p6) }
  0x12   : > { %s179_s21 = scalar_select %p178_p7, %s1611_s27, 24  ;;  %1217 = vmatpush1.bf16.msra.mxu0 %v1216_v14  ;;  %1251 = vmatpush1.bf16.msra.mxu1 %v1216_v14  ;;  %v1230_v36 = vpack.c.bf16 %v228_v33, %v226_v32  ;;  %v230_v40 = vld [vmem:[%s2219_s1 + $0xc8] sm:$0xff]  ;;  %v232_v41 = vld [vmem:[%s2219_s1 + $0xd8] sm:$0xff]  ;;  %v1232_v43 = vpack.c.bf16 %v227_v38, %v225_v37  ;;  %v229_v45 = vld [vmem:[%s2219_s1 + $0xc0] sm:$0xff] }
  0x13   : > { %1219 = vmatprep.subr.bf16.mxu0 %v1218_v15  ;;  %1244 = vmatprep.subr.bf16.mxu1 %v1218_v15  ;;  %v1234_v44 = vpack.c.bf16 %v232_v41, %v230_v40  ;;  %v231_v46 = vld [vmem:[%s2219_s1 + $0xd0] sm:$0xff]  ;;  %v234_v48 = vld [vmem:[%s2219_s1 + $0xe8] sm:$0xff]  ;;  %v236_v49 = vld [vmem:[%s2219_s1 + $0xf8] sm:$0xff]  ;;  %s1209_s17 = smul.u32 (%p1597_p4), 104, %s1585_s15 }
  0x14   : > { %s1183_s4 = sshll.u32 %s179_s21, 3  ;;  %v1236_v51 = vpack.c.bf16 %v231_v46, %v229_v45  ;;  %v1238_v52 = vpack.c.bf16 %v236_v49, %v234_v48  ;;  %v233_v53 = vld [vmem:[%s2219_s1 + $0xe0] sm:$0xff]  ;;  %v235_v54 = vld [vmem:[%s2219_s1 + $0xf0] sm:$0xff] }
  0x15   : > { %s1653_s7 = scalar_lea.vmem %s2218_s0, %s1183_s4  ;;  %v1240_v57 = vpack.c.bf16 %v235_v54, %v233_v53  ;;  %v1804_v1 = vld [vmem:[%s2220_s2] sm:$0x3]  ;;  %s2136_s23 = scalar_lea.vmem (%p1597_p4), %s2221_s3, %s1209_s17  }
  0x16   : > { %v1668_v26 = vld [vmem:[%s1653_s7] sm:$0xff]  ;;  %1221 = vmatpush1.bf16.msra.mxu0 %v1220_v20  ;;  %1252 = vmatpush1.bf16.msra.mxu1 %v1220_v20  ;;  %v1679_v31 = vld [vmem:[%s1653_s7 + $0x10] sm:$0xff]  ;;  %v1688_v34 = vld [vmem:[%s1653_s7 + $0x8] sm:$0xff]  ;;  %v1807_v2 = vrot.slane %v1804_v1, %v241_v0 }
  0x17   : > { %587 = vrot.lane.b32.xlu0 %v1668_v26, %s1549_s22  ;;  %1223 = vmatprep.subr.bf16.mxu0 %v1222_v21  ;;  %v1701_v39 = vld [vmem:[%s1653_s7 + $0x18] sm:$0xff]  ;;  %v1710_v42 = vld [vmem:[%s1653_s7 + $0x20] sm:$0xff]  ;;  %v1723_v47 = vld [vmem:[%s1653_s7 + $0x28] sm:$0xff] }
  0x18   : > { %1245 = vmatprep.subr.bf16.mxu1 %v1222_v21  ;;  %591 = vrot.lane.b32.xlu1 %v1679_v31, %s1549_s22  ;;  %v1732_v50 = vld [vmem:[%s1653_s7 + $0x30] sm:$0xff]  ;;  %v1745_v55 = vld [vmem:[%s1653_s7 + $0x38] sm:$0xff]  ;;  %v1748_v56 = vld [vmem:[%s1653_s7 + $0x40] sm:$0xff] }
  0x19   : > { %v1755_v58 = vld [vmem:[%s1653_s7 + $0x48] sm:$0xff]  ;;  %v1758_v59 = vld [vmem:[%s1653_s7 + $0x50] sm:$0xff]  ;;  %v1765_v60 = vld [vmem:[%s1653_s7 + $0x58] sm:$0xff] }
  0x1a   : > { %1225 = vmatpush1.bf16.msra.mxu0 %v1224_v27  ;;  %1253 = vmatpush1.bf16.msra.mxu1 %v1224_v27  ;;  %v1774_v61 = vld [vmem:[%s1653_s7 + $0x60] sm:$0xff] }
  0x1b   : > { %589 = vrot.lane.b32.xlu0 %v1688_v34, %s1549_s22  ;;  %1227 = vmatprep.subr.bf16.mxu0 %v1226_v28 }
  0x1c   : > { %1246 = vmatprep.subr.bf16.mxu1 %v1226_v28  ;;  %593 = vrot.lane.b32.xlu1 %v1701_v39, %s1549_s22 }
  0x1e   : > { %1229 = vmatpush1.bf16.msra.mxu0 %v1228_v35  ;;  %1254 = vmatpush1.bf16.msra.mxu1 %v1228_v35 }
  0x1f   : > { %595 = vrot.lane.b32.xlu0 %v1710_v42, %s1549_s22  ;;  %1231 = vmatprep.subr.bf16.mxu0 %v1230_v36 }
  0x20   : > { %1247 = vmatprep.subr.bf16.mxu1 %v1230_v36  ;;  %597 = vrot.lane.b32.xlu1 %v1723_v47, %s1549_s22 }
  0x22   : > { %1233 = vmatpush1.bf16.msra.mxu0 %v1232_v43  ;;  %1255 = vmatpush1.bf16.msra.mxu1 %v1232_v43 }
  0x23   : > { %599 = vrot.lane.b32.xlu0 %v1732_v50, %s1549_s22  ;;  %1235 = vmatprep.subr.bf16.mxu0 %v1234_v44 }
  0x24   : > { %1248 = vmatprep.subr.bf16.mxu1 %v1234_v44  ;;  %601 = vrot.lane.b32.xlu1 %v1745_v55, %s1549_s22 }
  0x26   : > { %1237 = vmatpush1.bf16.msra.mxu0 %v1236_v51  ;;  %1256 = vmatpush1.bf16.msra.mxu1 %v1236_v51 }
  0x27   : > { %603 = vrot.lane.b32.xlu0 %v1748_v56, %s1549_s22  ;;  %1239 = vmatprep.subr.bf16.mxu0 %v1238_v52 }
  0x28   : > { %1249 = vmatprep.subr.bf16.mxu1 %v1238_v52  ;;  %605 = vrot.lane.b32.xlu1 %v1755_v58, %s1549_s22 }
  0x2a   : > { %1241 = vmatpush1.bf16.msra.mxu0 %v1240_v57  ;;  %1257 = vmatpush1.bf16.msra.mxu1 %v1240_v57 }
  0x2b   : > { %607 = vrot.lane.b32.xlu0 %v1758_v59, %s1549_s22 }
  0x2c   : > { %609 = vrot.lane.b32.xlu1 %v1765_v60, %s1549_s22 }
  0x2d   : > { %314 = vmatmul.mubr.f32.vlgmr.msra.gmra.mrb[0].mxu0 %v1668_v26  ;;  %356 = vmatmul.mubr.f32.vlgmr.msra.gmra.mrb[0].mxu1 %v1745_v55 }
  0x2e   : > { %319 = vmatprep.mubr.f32.mxu0 %v1548_v7  ;;  %361 = vmatprep.mubr.f32.mxu1 %v1548_v7 }
  0x2f   : > { %611 = vrot.lane.b32.xlu0 %v1774_v61, %s1549_s22 }
  0x31   : > { %320 = vmatmul.mubr.f32.gmra.mrb[2].mxu0 %v1688_v34  ;;  %362 = vmatmul.mubr.f32.gmra.mrb[2].mxu1 %v1748_v56 }
  0x32   : > { %325 = vmatprep.mubr.f32.mxu0 %v1548_v7  ;;  %367 = vmatprep.mubr.f32.mxu1 %v1548_v7 }
  0x35   : > { %326 = vmatmul.mubr.f32.gmra.mrb[4].mxu0 %v1679_v31  ;;  %368 = vmatmul.mubr.f32.gmra.mrb[4].mxu1 %v1755_v58 }
  0x36   : > { %331 = vmatprep.mubr.f32.mxu0 %v1548_v7  ;;  %373 = vmatprep.mubr.f32.mxu1 %v1548_v7 }
  0x39   : > { %332 = vmatmul.mubr.f32.gmra.mrb[6].mxu0 %v1701_v39  ;;  %374 = vmatmul.mubr.f32.gmra.mrb[6].mxu1 %v1758_v59 }
  0x3a   : > { %337 = vmatprep.mubr.f32.mxu0 %v1548_v7  ;;  %379 = vmatprep.mubr.f32.mxu1 %v1548_v7 }
  0x3d   : > { %338 = vmatmul.mubr.f32.gmra.mrb[8].mxu0 %v1710_v42  ;;  %380 = vmatmul.mubr.f32.gmra.mrb[8].mxu1 %v1765_v60 }
  0x3e   : > { %343 = vmatprep.mubr.f32.mxu0 %v1548_v7  ;;  %385 = vmatprep.mubr.f32.mxu1 %v1548_v7 }
  0x41   : > { %344 = vmatmul.mubr.f32.gmra.mrb[10].mxu0 %v1723_v47  ;;  %386 = vmatmul.mubr.f32.gmra.mrb[10].mxu1 %v1774_v61 }
  0x42   : > { %349 = vmatprep.mubr.f32.mxu0 %v1548_v7 }
  0x45   : > { %350 = vmatmul.mubr.f32.gmra.mrb[12].mxu0 %v1732_v50 }
  0x89   : > { %v1829_v28 = vpop.permute.xlu0 %587 }
  0x8a   : > { %v1827_v27 = vpop.permute.xlu1 %591 }
  0x8d   : > { %v1843_v54 = vpop.permute.xlu0 %589 }
  0x8e   : > { %v1841_v51 = vpop.permute.xlu1 %593 }
 0x100   : > { %v315_v3 = vpop.f32.mrb[0].mxu0  ;;  %v357_v4 = vpop.f32.mrb[0].mxu1 }
 0x101   : > { %v316_v5 = vadd.f32 %v315_v3, %v1807_v2  ;;  %v358_v6 = vadd.f32 %v357_v4, %v1807_v2  ;;  %v1811_v7 = vpop.f32.mrb[1].mxu0  ;;  %v1813_v8 = vpop.f32.mrb[1].mxu1 }
 0x103   : > { %v1184_v9 = vmul.f32 -1.442695, %v316_v5  ;;  %v1191_v10 = vmul.f32 -1.442695, %v358_v6 }
 0x104   : > { %v321_v11 = vpop.f32.mrb[2].mxu0  ;;  %v363_v12 = vpop.f32.mrb[2].mxu1 }
 0x105   : > { %1352 = vpow2.f32 %v1184_v9  ;;  %v322_v13 = vadd.f32 %v321_v11, %v1807_v2  ;;  %v364_v14 = vadd.f32 %v363_v12, %v1807_v2  ;;  %v1817_v15 = vpop.f32.mrb[3].mxu0  ;;  %v1819_v16 = vpop.f32.mrb[3].mxu1 }
 0x106   : > { %1354 = vpow2.f32 %v1191_v10  ;;  %v1851_v12 = vpop.permute.xlu1 %597 }
 0x107   : > { %v1185_v17 = vmul.f32 -1.442695, %v322_v13  ;;  %v1192_v18 = vmul.f32 -1.442695, %v364_v14 }
 0x108   : > { %v327_v19 = vpop.f32.mrb[4].mxu0  ;;  %v369_v20 = vpop.f32.mrb[4].mxu1 }
 0x109   : > { %1356 = vpow2.f32 %v1185_v17  ;;  %v328_v21 = vadd.f32 %v327_v19, %v1807_v2  ;;  %v370_v22 = vadd.f32 %v369_v20, %v1807_v2  ;;  %v1823_v23 = vpop.f32.mrb[5].mxu0  ;;  %v1825_v24 = vpop.f32.mrb[5].mxu1 }
 0x10a   : > { %1358 = vpow2.f32 %v1192_v18 }
 0x10b   : > { %v1186_v25 = vmul.f32 -1.442695, %v328_v21  ;;  %v1193_v29 = vmul.f32 -1.442695, %v370_v22  ;;  %v1856_v21 = vpop.permute.xlu0 %595 }
 0x10c   : > { %v333_v30 = vpop.f32.mrb[6].mxu0  ;;  %v375_v32 = vpop.f32.mrb[6].mxu1 }
 0x10d   : > { %v1831_v33 = vpop.f32.mrb[7].mxu0  ;;  %v1833_v35 = vpop.f32.mrb[7].mxu1  ;;  %v334_v36 = vadd.f32 %v333_v30, %v1807_v2  ;;  %1360 = vpow2.f32 %v1186_v25  ;;  %v376_v38 = vadd.f32 %v375_v32, %v1807_v2 }
 0x10e   : > { %1362 = vpow2.f32 %v1193_v29 }
 0x10f   : > { %v1353_v37 = vpop.eup %1352  ;;  %v1187_v49 = vmul.f32 -1.442695, %v334_v36  ;;  %v1194_v53 = vmul.f32 -1.442695, %v376_v38  ;;  %v602_v36 = vpop.permute.xlu1 %601 }
 0x110   : > { %v1355_v40 = vpop.eup %1354  ;;  %v431_v41 = vadd.f32 1.0, %v1353_v37  ;;  %v339_v43 = vpop.f32.mrb[8].mxu0 }
 0x111   : > { %v381_v44 = vpop.f32.mrb[8].mxu1  ;;  %v438_v45 = vadd.f32 1.0, %v1355_v40  ;;  %v1837_v46 = vpop.f32.mrb[9].mxu0  ;;  %v340_v9 = vadd.f32 %v339_v43, %v1807_v2 }
 0x112   : > { %v1839_v48 = vpop.f32.mrb[9].mxu1  ;;  %1364 = vrcp.f32 %v431_v41  ;;  %v382_v10 = vadd.f32 %v381_v44, %v1807_v2 }
 0x113   : > { %v1357_v52 = vpop.eup %1356  ;;  %1366 = vrcp.f32 %v438_v45  ;;  %v1188_v18 = vmul.f32 -1.442695, %v340_v9 }
 0x114   : > { %v1359_v57 = vpop.eup %1358  ;;  %v345_v62 = vpop.f32.mrb[10].mxu0  ;;  %v432_v3 = vadd.f32 1.0, %v1357_v52  ;;  %1368 = vpow2.f32 %v1187_v49  ;;  %v1195_v19 = vmul.f32 -1.442695, %v382_v10 }
 0x115   : > { %v387_v0 = vpop.f32.mrb[10].mxu1  ;;  %v439_v4 = vadd.f32 1.0, %v1359_v57  ;;  %v1845_v5 = vpop.f32.mrb[11].mxu0  ;;  %1370 = vpow2.f32 %v1194_v53  ;;  %v346_v38 = vadd.f32 %v345_v62, %v1807_v2 }
 0x116   : > { %v1847_v6 = vpop.f32.mrb[11].mxu1  ;;  %v388_v20 = vadd.f32 %v387_v0, %v1807_v2 }
 0x117   : > { %1372 = vrcp.f32 %v439_v4  ;;  %v1361_v13 = vpop.eup %1360  ;;  %v1189_v52 = vmul.f32 -1.442695, %v346_v38 }
 0x118   : > { %v351_v11 = vpop.f32.mrb[12].mxu0  ;;  %1374 = vrcp.f32 %v432_v3  ;;  %v1363_v17 = vpop.eup %1362  ;;  %v433_v25 = vadd.f32 1.0, %v1361_v13  ;;  %v1196_v40 = vmul.f32 -1.442695, %v388_v20 }
 0x119   : > { %v1853_v14 = vpop.f32.mrb[13].mxu0  ;;  %v440_v30 = vadd.f32 1.0, %v1363_v17  ;;  %1376 = vpow2.f32 %v1188_v18  ;;  %v352_v53 = vadd.f32 %v351_v11, %v1807_v2  ;;  %v606_v20 = vpop.permute.xlu1 %605 }
 0x11a   : > { %1378 = vpow2.f32 %v1195_v19 }
 0x11b   : > { %1380 = vrcp.f32 %v433_v25 }
 0x11c   : > { %v1858_v22 = vpop.eup %1364  ;;  %1382 = vrcp.f32 %v440_v30 }
 0x11d   : > { %v1860_v29 = vpop.eup %1366  ;;  %v496_v32 = vmul.f32 %v1858_v22, %v1668_v26  ;;  %v1870_v26 = vpop.permute.xlu0 %599  ;;  %1384 = vpow2.f32 %v1196_v40 }
 0x11e   : > { %v503_v37 = vmul.f32 %v1860_v29, %v1745_v55  ;;  %v1369_v41 = vpop.eup %1368  ;;  %v633_v44 = vmul.f32 %v1860_v29, %v602_v36  ;;  %v626_v55 = vmul.f32 %v1858_v22, %v1829_v28  ;;  %1386 = vpow2.f32 %v1189_v52 }
 0x11f   : > { %522 = vrot.lane.b32.xlu1 %v496_v32, %s1549_s22  ;;  %v1371_v43 = vpop.eup %1370  ;;  %v434_v3 = vadd.f32 1.0, %v1369_v41  ;;  %v1190_v28 = vmul.f32 -1.442695, %v352_v53 }
 0x120   : > { %536 = vrot.lane.b32.xlu0 %v503_v37, %s1549_s22  ;;  %v441_v62 = vadd.f32 1.0, %v1371_v43 }
 0x121   : > { %v1872_v45 = vpop.eup %1372  ;;  %v604_v4 = vpop.permute.xlu0 %603 }
 0x122   : > { %v1876_v49 = vpop.eup %1374  ;;  %v504_v57 = vmul.f32 %v1872_v45, %v1748_v56  ;;  %1388 = vrcp.f32 %v441_v62  ;;  %v634_v11 = vmul.f32 %v1872_v45, %v604_v4 }
 0x123   : > { %666 = vrot.lane.b32.xlu1 %v633_v44, %s1550_s9  ;;  %v497_v0 = vmul.f32 %v1876_v49, %v1688_v34  ;;  %v1377_v9 = vpop.eup %1376  ;;  %1390 = vrcp.f32 %v434_v3  ;;  %v627_v56 = vmul.f32 %v1876_v49, %v1843_v54 }
 0x124   : > { %652 = vrot.lane.b32.xlu0 %v626_v55, %s1550_s9  ;;  %v1379_v2 = vpop.eup %1378  ;;  %1392 = vpow2.f32 %v1190_v28  ;;  %v435_v17 = vadd.f32 1.0, %v1377_v9  ;;  %v610_v28 = vpop.permute.xlu1 %609 }
 0x125   : > { %v1889_v10 = vpop.eup %1380  ;;  %v442_v54 = vadd.f32 1.0, %v1379_v2  ;;  %v608_v43 = vpop.permute.xlu0 %607 }
 0x126   : > { %v1892_v34 = vpop.eup %1382  ;;  %v498_v13 = vmul.f32 %v1889_v10, %v1679_v31  ;;  %1394 = vrcp.f32 %v435_v17  ;;  %v628_v36 = vmul.f32 %v1889_v10, %v1827_v27 }
 0x127   : > { %538 = vrot.lane.b32.xlu1 %v504_v57, %s1549_s22  ;;  %v505_v18 = vmul.f32 %v1892_v34, %v1755_v58  ;;  %v1385_v19 = vpop.eup %1384  ;;  %1396 = vrcp.f32 %v442_v54  ;;  %v635_v32 = vmul.f32 %v1892_v34, %v606_v20 }
 0x128   : > { %524 = vrot.lane.b32.xlu0 %v497_v0, %s1549_s22  ;;  %v443_v25 = vadd.f32 1.0, %v1385_v19  ;;  %v1387_v30 = vpop.eup %1386 }
 0x129   : > { %v436_v38 = vadd.f32 1.0, %v1387_v30  ;;  %v612_v4 = vpop.permute.xlu0 %611 }
 0x12a   : > { %1398 = vrcp.f32 %v443_v25 }
 0x12b   : > { %654 = vrot.lane.b32.xlu1 %v627_v56, %s1550_s9  ;;  %1400 = vrcp.f32 %v436_v38 }
 0x12c   : > { %668 = vrot.lane.b32.xlu0 %v634_v11, %s1550_s9  ;;  %v1903_v31 = vpop.eup %1388 }
 0x12d   : > { %v1907_v37 = vpop.eup %1390  ;;  %v506_v58 = vmul.f32 %v1903_v31, %v1758_v59  ;;  %v636_v59 = vmul.f32 %v1903_v31, %v608_v43 }
 0x12e   : > { %v499_v40 = vmul.f32 %v1907_v37, %v1701_v39  ;;  %v1393_v41 = vpop.eup %1392  ;;  %v629_v44 = vmul.f32 %v1907_v37, %v1841_v51 }
 0x12f   : > { %526 = vrot.lane.b32.xlu1 %v498_v13, %s1549_s22  ;;  %v437_v27 = vadd.f32 1.0, %v1393_v41 }
 0x130   : > { %540 = vrot.lane.b32.xlu0 %v505_v18, %s1549_s22  ;;  %v1919_v55 = vpop.eup %1394 }
 0x131   : > { %v1922_v52 = vpop.eup %1396  ;;  %v500_v39 = vmul.f32 %v1919_v55, %v1710_v42  ;;  %1402 = vrcp.f32 %v437_v27  ;;  %v630_v42 = vmul.f32 %v1919_v55, %v1856_v21 }
 0x132   : > { %v507_v53 = vmul.f32 %v1922_v52, %v1765_v60 }
 0x133   : > { %670 = vrot.lane.b32.xlu1 %v635_v32, %s1550_s9 }
 0x134   : > { %656 = vrot.lane.b32.xlu0 %v628_v36, %s1550_s9  ;;  %v1930_v57 = vpop.eup %1398 }
 0x135   : > { %v508_v51 = vmul.f32 %v1930_v57, %v1774_v61  ;;  %v1936_v62 = vpop.eup %1400 }
 0x136   : > { %v501_v60 = vmul.f32 %v1936_v62, %v1723_v47  ;;  %v631_v0 = vmul.f32 %v1936_v62, %v1851_v12  ;;  %v637_v47 = vmul.f32 %v1922_v52, %v610_v28  ;;  %v638_v12 = vmul.f32 %v1930_v57, %v612_v4 }
 0x137   : > { %542 = vrot.lane.b32.xlu1 %v506_v58, %s1549_s22 }
 0x138   : > { %528 = vrot.lane.b32.xlu0 %v499_v40, %s1549_s22 }
 0x13b   : > { %658 = vrot.lane.b32.xlu1 %v629_v44, %s1550_s9  ;;  %v1946_v3 = vpop.eup %1402 }
 0x13c   : > { %672 = vrot.lane.b32.xlu0 %v636_v59, %s1550_s9  ;;  %v502_v61 = vmul.f32 %v1946_v3, %v1732_v50  ;;  %v632_v21 = vmul.f32 %v1946_v3, %v1870_v26  ;;  %v245_v50 = vsub.s32 1, %v1798_v63 }
 0x13e   : > { %v1962_v9 = vrot.slane %v1804_v1, %v245_v50 }
 0x13f   : > { %530 = vrot.lane.b32.xlu1 %v500_v39, %s1549_s22 }
 0x140   : > { %544 = vrot.lane.b32.xlu0 %v507_v53, %s1549_s22  ;;  %v360_v26 = vadd.f32 %v1813_v8, %v1962_v9  ;;  %v318_v2 = vadd.f32 %v1811_v7, %v1962_v9  ;;  %v324_v56 = vadd.f32 %v1817_v15, %v1962_v9  ;;  %v366_v11 = vadd.f32 %v1819_v16, %v1962_v9 }
 0x141   : > { %v330_v17 = vadd.f32 %v1823_v23, %v1962_v9  ;;  %v372_v7 = vadd.f32 %v1825_v24, %v1962_v9  ;;  %v336_v32 = vadd.f32 %v1831_v33, %v1962_v9  ;;  %v378_v40 = vadd.f32 %v1833_v35, %v1962_v9 }
 0x142   : > { %1404 = vtanh.f32 %v360_v26 }
 0x143   : > { %546 = vrot.lane.b32.xlu1 %v508_v51, %s1549_s22  ;;  %1406 = vtanh.f32 %v318_v2 }
 0x144   : > { %660 = vrot.lane.b32.xlu0 %v630_v42, %s1550_s9  ;;  %1408 = vtanh.f32 %v324_v56 }
 0x145   : > { %1410 = vtanh.f32 %v366_v11 }
 0x146   : > { %1412 = vtanh.f32 %v330_v17 }
 0x147   : > { %662 = vrot.lane.b32.xlu1 %v631_v0, %s1550_s9  ;;  %1414 = vtanh.f32 %v372_v7  ;;  %v354_v7 = vadd.f32 %v1853_v14, %v1962_v9 }
 0x148   : > { %532 = vrot.lane.b32.xlu0 %v501_v60, %s1549_s22  ;;  %v342_v60 = vadd.f32 %v1837_v46, %v1962_v9  ;;  %v348_v46 = vadd.f32 %v1845_v5, %v1962_v9 }
 0x14b   : > { %534 = vrot.lane.b32.xlu1 %v502_v61, %s1549_s22 }
 0x14c   : > { %664 = vrot.lane.b32.xlu0 %v632_v21, %s1550_s9  ;;  %v1405_v63 = vpop.eup %1404 }
 0x14d   : > { %v1407_v1 = vpop.eup %1406  ;;  %v490_v8 = vmul.f32 %v1405_v63, %v1860_v29 }
 0x14e   : > { %v483_v19 = vmul.f32 %v1407_v1, %v1858_v22  ;;  %v1409_v23 = vpop.eup %1408  ;;  %v384_v1 = vadd.f32 %v1839_v48, %v1962_v9  ;;  %v390_v48 = vadd.f32 %v1847_v6, %v1962_v9 }
 0x14f   : > { %674 = vrot.lane.b32.xlu1 %v637_v47, %s1550_s9  ;;  %v1411_v36 = vpop.eup %1410  ;;  %v484_v58 = vmul.f32 %v1409_v23, %v1876_v49 }
 0x150   : > { %676 = vrot.lane.b32.xlu0 %v638_v12, %s1550_s9  ;;  %v491_v41 = vmul.f32 %v1411_v36, %v1872_v45  ;;  %v1413_v53 = vpop.eup %1412 }
 0x151   : > { %v1415_v51 = vpop.eup %1414  ;;  %v485_v28 = vmul.f32 %v1413_v53, %v1889_v10 }
 0x152   : > { %v492_v0 = vmul.f32 %v1415_v51, %v1892_v34 }
 0x191   : > { %v523_v13 = vpop.permute.xlu1 %522 }
 0x192   : > { %v537_v18 = vpop.permute.xlu0 %536  ;;  %v561_v54 = vadd.f32 %v523_v13, %v483_v19 }
 0x193   : > { %v568_v15 = vadd.f32 %v537_v18, %v490_v8 }
 0x195   : > { %v667_v20 = vpop.permute.xlu1 %666 }
 0x196   : > { %v653_v16 = vpop.permute.xlu0 %652  ;;  %v1978_v25 = vadd.f32 %v667_v20, %v568_v15 }
 0x197   : > { %v1980_v30 = vadd.f32 %v653_v16, %v561_v54 }
 0x198   : > { %1416 = vtanh.f32 %v1978_v25 }
 0x199   : > { %1418 = vtanh.f32 %v1980_v30  ;;  %v539_v24 = vpop.permute.xlu1 %538 }
 0x19a   : > { %v525_v38 = vpop.permute.xlu0 %524  ;;  %1420 = vtanh.f32 %v336_v32  ;;  %v569_v27 = vadd.f32 %v539_v24, %v491_v41 }
 0x19b   : > { %v562_v43 = vadd.f32 %v525_v38, %v484_v58  ;;  %1422 = vtanh.f32 %v378_v40 }
 0x19d   : > { %v655_v44 = vpop.permute.xlu1 %654 }
 0x19e   : > { %v669_v59 = vpop.permute.xlu0 %668  ;;  %v1990_v39 = vadd.f32 %v655_v44, %v562_v43 }
 0x19f   : > { %v1992_v33 = vadd.f32 %v669_v59, %v569_v27 }
 0x1a0   : > { %1424 = vtanh.f32 %v1990_v39 }
 0x1a1   : > { %1426 = vtanh.f32 %v1992_v33  ;;  %v527_v42 = vpop.permute.xlu1 %526 }
 0x1a2   : > { %v1417_v35 = vpop.eup %1416  ;;  %v541_v61 = vpop.permute.xlu0 %540  ;;  %v563_v47 = vadd.f32 %v527_v42, %v485_v28  ;;  %1428 = vtanh.f32 %v342_v60 }
 0x1a3   : > { %v1419_v21 = vpop.eup %1418  ;;  %744 = vrot.lane.b32.xlu0 %v1417_v35, %s1549_s22  ;;  %v570_v4 = vadd.f32 %v541_v61, %v492_v0 }
 0x1a4   : > { %730 = vrot.lane.b32.xlu1 %v1419_v21, %s1549_s22  ;;  %v1421_v2 = vpop.eup %1420 }
 0x1a5   : > { %v671_v12 = vpop.permute.xlu1 %670  ;;  %v1423_v11 = vpop.eup %1422  ;;  %v486_v17 = vmul.f32 %v1421_v2, %v1907_v37 }
 0x1a6   : > { %v657_v50 = vpop.permute.xlu0 %656  ;;  %v2002_v26 = vadd.f32 %v671_v12, %v570_v4  ;;  %v493_v19 = vmul.f32 %v1423_v11, %v1903_v31 }
 0x1a7   : > { %v2004_v56 = vadd.f32 %v657_v50, %v563_v47 }
 0x1a8   : > { %1430 = vtanh.f32 %v2002_v26 }
 0x1a9   : > { %1432 = vtanh.f32 %v2004_v56  ;;  %v543_v63 = vpop.permute.xlu1 %542 }
 0x1aa   : > { %v1425_v13 = vpop.eup %1424  ;;  %v529_v8 = vpop.permute.xlu0 %528  ;;  %1434 = vtanh.f32 %v348_v46  ;;  %v571_v15 = vadd.f32 %v543_v63, %v493_v19 }
 0x1ab   : > { %v1427_v18 = vpop.eup %1426  ;;  %732 = vrot.lane.b32.xlu0 %v1425_v13, %s1549_s22  ;;  %v564_v5 = vadd.f32 %v529_v8, %v486_v17  ;;  %1436 = vtanh.f32 %v384_v1 }
 0x1ac   : > { %746 = vrot.lane.b32.xlu1 %v1427_v18, %s1549_s22  ;;  %1438 = vtanh.f32 %v354_v7  ;;  %v1429_v14 = vpop.eup %1428 }
 0x1ad   : > { %v659_v54 = vpop.permute.xlu1 %658  ;;  %v487_v38 = vmul.f32 %v1429_v14, %v1919_v55 }
 0x1ae   : > { %v673_v20 = vpop.permute.xlu0 %672  ;;  %v694_v16 = vadd.f32 %v659_v54, %v564_v5 }
 0x1af   : > { %v2020_v23 = vadd.f32 %v673_v20, %v571_v15 }
 0x1b0   : > { %1440 = vtanh.f32 %v694_v16 }
 0x1b1   : > { %1442 = vtanh.f32 %v2020_v23  ;;  %v531_v32 = vpop.permute.xlu1 %530 }
 0x1b2   : > { %v1431_v24 = vpop.eup %1430  ;;  %1444 = vtanh.f32 %v390_v48  ;;  %v545_v36 = vpop.permute.xlu0 %544  ;;  %v565_v6 = vadd.f32 %v531_v32, %v487_v38 }
 0x1b3   : > { %v1433_v58 = vpop.eup %1432  ;;  %748 = vrot.lane.b32.xlu0 %v1431_v24, %s1549_s22 }
 0x1b4   : > { %734 = vrot.lane.b32.xlu1 %v1433_v58, %s1549_s22  ;;  %v1435_v40 = vpop.eup %1434 }
 0x1b5   : > { %v547_v9 = vpop.permute.xlu1 %546  ;;  %v1437_v27 = vpop.eup %1436  ;;  %v488_v59 = vmul.f32 %v1435_v40, %v1936_v62 }
 0x1b6   : > { %v661_v41 = vpop.permute.xlu0 %660  ;;  %v1439_v44 = vpop.eup %1438  ;;  %v494_v4 = vmul.f32 %v1437_v27, %v1922_v52 }
 0x1b7   : > { %v695_v43 = vadd.f32 %v661_v41, %v565_v6  ;;  %v489_v61 = vmul.f32 %v1439_v44, %v1946_v3 }
 0x1b8   : > { %v572_v2 = vadd.f32 %v545_v36, %v494_v4 }
 0x1b9   : > { %1446 = vtanh.f32 %v695_v43  ;;  %v663_v53 = vpop.permute.xlu1 %662 }
 0x1ba   : > { %v1441_v51 = vpop.eup %1440  ;;  %v533_v42 = vpop.permute.xlu0 %532 }
 0x1bb   : > { %v1443_v35 = vpop.eup %1442  ;;  %v566_v60 = vadd.f32 %v533_v42, %v488_v59  ;;  %736 = vrot.lane.b32.xlu0 %v1441_v51, %s1549_s22 }
 0x1bc   : > { %v1445_v0 = vpop.eup %1444  ;;  %750 = vrot.lane.b32.xlu1 %v1443_v35, %s1549_s22 }
 0x1bd   : > { %v696_v21 = vadd.f32 %v663_v53, %v566_v60  ;;  %v535_v28 = vpop.permute.xlu1 %534  ;;  %v495_v50 = vmul.f32 %v1445_v0, %v1930_v57 }
 0x1be   : > { %v665_v47 = vpop.permute.xlu0 %664  ;;  %v567_v12 = vadd.f32 %v535_v28, %v489_v61 }
 0x1bf   : > { %1448 = vtanh.f32 %v696_v21  ;;  %v573_v11 = vadd.f32 %v547_v9, %v495_v50 }
 0x1c0   : > { %v697_v46 = vadd.f32 %v665_v47, %v567_v12 }
 0x1c1   : > { %v675_v63 = vpop.permute.xlu1 %674 }
 0x1c2   : > { %1450 = vtanh.f32 %v697_v46  ;;  %v677_v13 = vpop.permute.xlu0 %676  ;;  %v2032_v1 = vadd.f32 %v675_v63, %v572_v2 }
 0x1c3   : > { %v1447_v17 = vpop.eup %1446  ;;  %v703_v8 = vadd.f32 %v677_v13, %v573_v11 }
 0x1c4   : > { %1452 = vtanh.f32 %v2032_v1  ;;  %738 = vrot.lane.b32.xlu1 %v1447_v17, %s1549_s22 }
 0x1c5   : > { %1454 = vtanh.f32 %v703_v8 }
 0x1c9   : > { %v1449_v18 = vpop.eup %1448 }
 0x1ca   : > { %740 = vrot.lane.b32.xlu0 %v1449_v18, %s1549_s22 }
 0x1cc   : > { %v1451_v7 = vpop.eup %1450 }
 0x1cd   : > { %742 = vrot.lane.b32.xlu1 %v1451_v7, %s1549_s22 }
 0x1ce   : > { %v1453_v19 = vpop.eup %1452 }
 0x1cf   : > { %752 = vrot.lane.b32.xlu0 %v1453_v19, %s1549_s22  ;;  %v1455_v5 = vpop.eup %1454 }
 0x1d1   : > { %754 = vrot.lane.b32.xlu1 %v1455_v5, %s1549_s22  ;;  %s170_s22 = sand.u32 1, %s1506_s12   ;;  %s922_s12 = ssub.s32 (%p1597_p4), 25, %s1611_s27 }
 0x1d2   : > { %s1258_s11 = smul.u32 104, %s170_s22  ;;  %p923_p8 = scmp.lt.s32.totalorder (%p1597_p4), %s922_s12, 13 }
 0x1d3   : > { %849 = vrot.lane.b32.xlu0 %v1990_v39, %s1551_s10 }
 0x1d4   : > { %s2090_s14 = scalar_lea.vmem [#allocation2], %s1258_s11  }
 0x1d5   : > { %847 = vrot.lane.b32.xlu1 %v1980_v30, %s1551_s10 }
 0x1d7   : > { %853 = vrot.lane.b32.xlu0 %v694_v16, %s1551_s10 }
 0x1d9   : > { %851 = vrot.lane.b32.xlu1 %v2004_v56, %s1551_s10 }
 0x1db   : > { %857 = vrot.lane.b32.xlu0 %v696_v21, %s1551_s10 }
 0x1dd   : > { %855 = vrot.lane.b32.xlu1 %v695_v43, %s1551_s10 }
 0x1df   : > { %861 = vrot.lane.b32.xlu0 %v1978_v25, %s1551_s10 }
 0x1e1   : > { %859 = vrot.lane.b32.xlu1 %v697_v46, %s1551_s10 }
 0x1e3   : > { %865 = vrot.lane.b32.xlu0 %v2002_v26, %s1551_s10 }
 0x1e5   : > { %863 = vrot.lane.b32.xlu1 %v1992_v33, %s1551_s10 }
 0x1e9   : > { %867 = vrot.lane.b32.xlu1 %v2020_v23, %s1551_s10 }
 0x215   : > { %v745_v30 = vpop.permute.xlu0 %744 }
 0x216   : > { %v776_v39 = vmul.f32 %v1860_v29, %v745_v30  ;;  %v731_v56 = vpop.permute.xlu1 %730 }
 0x217   : > { %v769_v15 = vmul.f32 %v1858_v22, %v731_v56 }
 0x218   : > { %809 = vrot.lane.b32.xlu1 %v776_v39, %s1551_s10 }
 0x219   : > { %795 = vrot.lane.b32.xlu0 %v769_v15, %s1551_s10 }
 0x21d   : > { %v733_v25 = vpop.permute.xlu0 %732 }
 0x21e   : > { %v770_v54 = vmul.f32 %v1876_v49, %v733_v25  ;;  %v747_v26 = vpop.permute.xlu1 %746 }
 0x21f   : > { %v777_v48 = vmul.f32 %v1872_v45, %v747_v26 }
 0x220   : > { %797 = vrot.lane.b32.xlu1 %v770_v54, %s1551_s10 }
 0x221   : > { %811 = vrot.lane.b32.xlu0 %v777_v48, %s1551_s10 }
 0x225   : > { %v749_v33 = vpop.permute.xlu0 %748 }
 0x226   : > { %v778_v29 = vmul.f32 %v1892_v34, %v749_v33  ;;  %v735_v20 = vpop.permute.xlu1 %734 }
 0x227   : > { %v771_v22 = vmul.f32 %v1889_v10, %v735_v20 }
 0x228   : > { %813 = vrot.lane.b32.xlu1 %v778_v29, %s1551_s10 }
 0x229   : > { %799 = vrot.lane.b32.xlu0 %v771_v22, %s1551_s10 }
 0x22d   : > { %v737_v16 = vpop.permute.xlu0 %736 }
 0x22e   : > { %v772_v49 = vmul.f32 %v1907_v37, %v737_v16  ;;  %v751_v23 = vpop.permute.xlu1 %750 }
 0x22f   : > { %v779_v45 = vmul.f32 %v1903_v31, %v751_v23 }
 0x230   : > { %801 = vrot.lane.b32.xlu1 %v772_v49, %s1551_s10 }
 0x231   : > { %815 = vrot.lane.b32.xlu0 %v779_v45, %s1551_s10 }
 0x236   : > { %v739_v14 = vpop.permute.xlu1 %738 }
 0x237   : > { %v773_v34 = vmul.f32 %v1919_v55, %v739_v14 }
 0x239   : > { %803 = vrot.lane.b32.xlu0 %v773_v34, %s1551_s10 }
 0x23c   : > { %v741_v10 = vpop.permute.xlu0 %740 }
 0x23d   : > { %v774_v31 = vmul.f32 %v1936_v62, %v741_v10 }
 0x23f   : > { %v743_v32 = vpop.permute.xlu1 %742 }
 0x240   : > { %v775_v38 = vmul.f32 %v1946_v3, %v743_v32 }
 0x241   : > { %v753_v24 = vpop.permute.xlu0 %752 }
 0x242   : > { %v780_v36 = vmul.f32 %v1922_v52, %v753_v24 }
 0x243   : > { %v755_v58 = vpop.permute.xlu1 %754 }
 0x244   : > { %v781_v37 = vmul.f32 %v1930_v57, %v755_v58  ;;  %817 = vrot.lane.b32.xlu1 %v780_v36, %s1551_s10 }
 0x245   : > { %v850_v57 = vpop.permute.xlu0 %849 }
 0x246   : > { %819 = vrot.lane.b32.xlu0 %v781_v37, %s1551_s10 }
 0x247   : > { %v848_v55 = vpop.permute.xlu1 %847 }
 0x248   : > { %805 = vrot.lane.b32.xlu1 %v774_v31, %s1551_s10 }
 0x249   : > { %v854_v9 = vpop.permute.xlu0 %853 }
 0x24a   : > { %807 = vrot.lane.b32.xlu0 %v775_v38, %s1551_s10 }
 0x24b   : > { %v852_v52 = vpop.permute.xlu1 %851 }
 0x24c   : > { %871 = vrot.lane.b32.xlu1 %v703_v8, %s1551_s10 }
 0x24d   : > { %v858_v40 = vpop.permute.xlu0 %857 }
 0x24e   : > { %869 = vrot.lane.b32.xlu0 %v2032_v1, %s1551_s10 }
 0x24f   : > { %v856_v6 = vpop.permute.xlu1 %855 }
 0x251   : > { %v862_v43 = vpop.permute.xlu0 %861 }
 0x253   : > { %v860_v62 = vpop.permute.xlu1 %859 }
 0x255   : > { %v866_v27 = vpop.permute.xlu0 %865 }
 0x257   : > { %v864_v41 = vpop.permute.xlu1 %863 }
 0x25b   : > { %v868_v3 = vpop.permute.xlu1 %867 }
 0x28a   : > { %v810_v44 = vpop.permute.xlu1 %809 }
 0x28b   : > { %v796_v59 = vpop.permute.xlu0 %795  ;;  %v894_v53 = vsel %vm886_vm0, %v810_v44, %v862_v43 }
 0x28c   : > { %v887_v51 = vsel %vm886_vm0, %v796_v59, %v848_v55  ;;  %908 = vst.msk [vmem:[%s2090_s14 + $0x38] sm:$0xff] %vm900_vm1, %v894_v53 }
 0x28d   : > { %901 = vst.msk [vmem:[%s2090_s14] sm:$0xff] %vm900_vm1, %v887_v51 }
 0x292   : > { %v798_v42 = vpop.permute.xlu1 %797 }
 0x293   : > { %v812_v35 = vpop.permute.xlu0 %811  ;;  %v888_v60 = vsel %vm886_vm0, %v798_v42, %v850_v57 }
 0x294   : > { %v895_v0 = vsel %vm886_vm0, %v812_v35, %v864_v41  ;;  %902 = vst.msk [vmem:[%s2090_s14 + $0x8] sm:$0xff] %vm900_vm1, %v888_v60 }
 0x295   : > { %909 = vst.msk [vmem:[%s2090_s14 + $0x40] sm:$0xff] %vm900_vm1, %v895_v0 }
 0x29a   : > { %v814_v61 = vpop.permute.xlu1 %813 }
 0x29b   : > { %v800_v21 = vpop.permute.xlu0 %799  ;;  %v896_v28 = vsel %vm886_vm0, %v814_v61, %v866_v27 }
 0x29c   : > { %v889_v4 = vsel %vm886_vm0, %v800_v21, %v852_v52  ;;  %910 = vst.msk [vmem:[%s2090_s14 + $0x48] sm:$0xff] %vm900_vm1, %v896_v28 }
 0x29d   : > { %903 = vst.msk [vmem:[%s2090_s14 + $0x10] sm:$0xff] %vm900_vm1, %v889_v4 }
 0x2a2   : > { %v802_v47 = vpop.permute.xlu1 %801 }
 0x2a3   : > { %v816_v12 = vpop.permute.xlu0 %815  ;;  %v890_v50 = vsel %vm886_vm0, %v802_v47, %v854_v9 }
 0x2a4   : > { %v897_v2 = vsel %vm886_vm0, %v816_v12, %v868_v3  ;;  %904 = vst.msk [vmem:[%s2090_s14 + $0x18] sm:$0xff] %vm900_vm1, %v890_v50 }
 0x2a5   : > { %911 = vst.msk [vmem:[%s2090_s14 + $0x50] sm:$0xff] %vm900_vm1, %v897_v2 }
 0x2ab   : > { %v804_v46 = vpop.permute.xlu0 %803 }
 0x2ac   : > { %v891_v11 = vsel %vm886_vm0, %v804_v46, %v856_v6 }
 0x2ad   : > { %905 = vst.msk [vmem:[%s2090_s14 + $0x20] sm:$0xff] %vm900_vm1, %v891_v11 }
 0x2b6   : > { %v818_v63 = vpop.permute.xlu1 %817 }
 0x2b8   : > { %v820_v13 = vpop.permute.xlu0 %819 }
 0x2ba   : > { %v806_v1 = vpop.permute.xlu1 %805 }
 0x2bb   : > { %v892_v17 = vsel %vm886_vm0, %v806_v1, %v858_v40 }
 0x2bc   : > { %906 = vst.msk [vmem:[%s2090_s14 + $0x28] sm:$0xff] %vm900_vm1, %v892_v17  ;;  %v808_v8 = vpop.permute.xlu0 %807  ;;  %920 = sbr.rel (!%p1597_p4) target bundleno = 768 (0x300), region = 36 }
 0x2bd   : > { %v893_v18 = vsel %vm886_vm0, %v808_v8, %v860_v62 }
 0x2be   : > { %907 = vst.msk [vmem:[%s2090_s14 + $0x30] sm:$0xff] %vm900_vm1, %v893_v18  ;;  %v872_v7 = vpop.permute.xlu1 %871 }
 0x2bf   : > { %v899_v19 = vsel %vm886_vm0, %v820_v13, %v872_v7 }
 0x2c0   : > { %913 = vst.msk [vmem:[%s2090_s14 + $0x60] sm:$0xff] %vm900_vm1, %v899_v19  ;;  %v870_v5 = vpop.permute.xlu0 %869 }
 0x2c1   : > { %v898_v30 = vsel %vm886_vm0, %v818_v63, %v870_v5 }
 0x2c2   : > { %912 = vst.msk [vmem:[%s2090_s14 + $0x58] sm:$0xff] %vm900_vm1, %v898_v30 }
 0x2c3   : > { %s2230_s12 = smov (!%p923_p8, %s922_s12), 13 }
 0x2c4   : > { %s1197_s24 = sshll.u32 %s2230_s12, 7 }
 0x2c5   : > { %p1200_p9 = scmp.eq.s32.totalorder %s1197_s24, 0 }
 0x2c6   : > { %1456 = sdivrem.u32 (!%p1200_p9), %s2230_s12, 13 }
 0x2c7   : > { %931 = sbr.rel (%p1200_p9) target bundleno = 768 (0x300), region = 40 }
 0x2cf   : > { %s2142_s20 = spop.drf %1456 }
 0x2d0   : > { %p1201_p10 = scmp.le.s32.totalorder %s2142_s20, 0 }
 0x2d1   : > { %s2223_s15 = smov (!%p1201_p10), %s2136_s23  ;;  %s2224_s27 = smov (!%p1201_p10), %s2090_s14 }
 0x2d2   : > { %1135 = sbr.rel (%p1201_p10) target bundleno = 739 (0x2e3), region = 116  ;;  %s2151_s25 = smov (!%p1201_p10), 0  }
 0x2d3   : > { %s2153_s26 = smov (!%p1201_p10), 0  }
 0x2d9 LB: >> { %v1019_v39 = vld [vmem:[%s1522_s27] sm:$0xff]  ;;  %v1021_v56 = vld [vmem:[%s1522_s27 + $0x8] sm:$0xff]  ;;  %v1023_v15 = vld [vmem:[%s1522_s27 + $0x10] sm:$0xff]  ;;  %s1045_s28 = sadd.s32 1, %s1526_s25  ;;  %s1013_s26 = sadd.s32 1, %s1530_s26   ;;  %s1530_s26 = sphi %s2153_s26, %s1013_s26   ;;  %s1526_s25 = sphi %s2151_s25, %s2225_s25   ;;  %s1522_s27 = sphi %s2224_s27, %s1050_s27   ;;  %s1518_s15 = sphi %s2223_s15, %s1051_s15  }
 0x2da   : >> { %1020 = vst [vmem:[%s1518_s15] sm:$0xff] %v1019_v39  ;;  %1022 = vst [vmem:[%s1518_s15 + $0x8] sm:$0xff] %v1021_v56  ;;  %v1025_v25 = vld [vmem:[%s1522_s27 + $0x18] sm:$0xff]  ;;  %v1027_v54 = vld [vmem:[%s1522_s27 + $0x20] sm:$0xff]  ;;  %p1046_p11 = scmp.ge.s32.totalorder %s1045_s28, %s2142_s20  ;;  %p1012_p12 = scmp.ge.s32.totalorder %s1013_s26, %s2142_s20 }
 0x2db   : >> { %1024 = vst [vmem:[%s1518_s15 + $0x10] sm:$0xff] %v1023_v15  ;;  %v1029_v26 = vld [vmem:[%s1522_s27 + $0x28] sm:$0xff]  ;;  %1026 = vst [vmem:[%s1518_s15 + $0x18] sm:$0xff] %v1025_v25  ;;  %v1031_v48 = vld [vmem:[%s1522_s27 + $0x30] sm:$0xff] }
 0x2dc   : >> { %1028 = vst [vmem:[%s1518_s15 + $0x20] sm:$0xff] %v1027_v54  ;;  %1030 = vst [vmem:[%s1518_s15 + $0x28] sm:$0xff] %v1029_v26  ;;  %v1033_v33 = vld [vmem:[%s1522_s27 + $0x38] sm:$0xff]  ;;  %v1035_v29 = vld [vmem:[%s1522_s27 + $0x40] sm:$0xff]  ;;  %s2232_s28 = smov (%p1046_p11, %s1045_s28), 0  ;;  %1015 = sbr.rel (!%p1012_p12) target bundleno = 729 (0x2d9), region = 122 }
 0x2dd   : >> { %1032 = vst [vmem:[%s1518_s15 + $0x30] sm:$0xff] %v1031_v48  ;;  %1034 = vst [vmem:[%s1518_s15 + $0x38] sm:$0xff] %v1033_v33  ;;  %v1037_v20 = vld [vmem:[%s1522_s27 + $0x48] sm:$0xff]  ;;  %v1039_v22 = vld [vmem:[%s1522_s27 + $0x50] sm:$0xff]  ;;  %s1048_s29 = smul.u32 104, %s2232_s28  ;;  %s2225_s25 = smov %s2232_s28 }
 0x2de   : >> { %1036 = vst [vmem:[%s1518_s15 + $0x40] sm:$0xff] %v1035_v29  ;;  %v1041_v16 = vld [vmem:[%s1522_s27 + $0x58] sm:$0xff]  ;;  %1038 = vst [vmem:[%s1518_s15 + $0x48] sm:$0xff] %v1037_v20  ;;  %v1043_v49 = vld [vmem:[%s1522_s27 + $0x60] sm:$0xff] }
 0x2df   : >> { %1040 = vst [vmem:[%s1518_s15 + $0x50] sm:$0xff] %v1039_v22  ;;  %1042 = vst [vmem:[%s1518_s15 + $0x58] sm:$0xff] %v1041_v16  ;;  %s1050_s27 = scalar_lea.vmem %s2090_s14, %s1048_s29 [#allocation2]  }
 0x2e0   : >> { %1044 = vst [vmem:[%s1518_s15 + $0x60] sm:$0xff] %v1043_v49  ;;  %s1051_s15 = scalar_lea.vmem %s2136_s23, %s1048_s29  }
 0x2e3 PF: > { %1458 = sdivrem.u32 %s2230_s12, 13 }
 0x2e4   : > { %s1202_s30 = smul.u32 104, %s2142_s20 }
 0x2e6   : > { %s1056_s4 = scalar_lea.vmem %s2090_s14, %s1202_s30 [#allocation2]   ;;  %s1058_s5 = scalar_lea.vmem %s2136_s23, %s1202_s30  }
 0x2ec   : > { %s1459_s6 = spop.drf %1458 }
 0x2ed   : > { %p1204_p13 = scmp.le.s32.totalorder %s1459_s6, 0 }
 0x2ee   : > { %s1532_s7 = smov (!%p1204_p13), %s1058_s5   ;;  %s1536_s8 = smov (!%p1204_p13), %s1056_s4  }
 0x2ef   : > { %1149 = sbr.rel (%p1204_p13) target bundleno = 768 (0x300), region = 127  ;;  %s1540_s9 = smov (!%p1204_p13), 0  }
 0x2f0   : > { %s1544_s10 = smov (!%p1204_p13), 0  }
 0x2f6 LB: >> { %v1068_v23 = vld [vmem:[%s1538_s8] sm:$0xff]  ;;  %s1070_s22 = sadd.s32 1, %s1542_s9  ;;  %s1062_s10 = sadd.s32 1, %s1546_s10   ;;  %s1546_s10 = sphi %s1544_s10, %s1062_s10   ;;  %s1542_s9 = sphi %s1540_s9, %s1541_s9   ;;  %s1538_s8 = sphi %s1536_s8, %s1075_s8   ;;  %s1534_s7 = sphi %s1532_s7, %s1076_s7  }
 0x2f7   : >> { %1069 = vst [vmem:[%s1534_s7] sm:$0xff] %v1068_v23  ;;  %p1071_p0 = scmp.ge.s32.totalorder %s1070_s22, %s1459_s6  ;;  %p1061_p1 = scmp.ge.s32.totalorder %s1062_s10, %s1459_s6 }
 0x2f9   : >> { %s2234_s22 = smov (%p1071_p0, %s1070_s22), 0  ;;  %1064 = sbr.rel (!%p1061_p1) target bundleno = 758 (0x2f6), region = 133 }
 0x2fa   : >> { %s1205_s11 = sshll.u32 %s2234_s22, 3  ;;  %s1541_s9 = smov %s2234_s22  }
 0x2fb   : >> { %s1075_s8 = scalar_lea.vmem %s1056_s4, %s1205_s11 [#allocation2]   ;;  %s1076_s7 = scalar_lea.vmem %s1058_s5, %s1205_s11  }
 0x300 PF: > { %p10_p2 = scmp.ge.s32.totalorder %s1587_s16, 4   ;;  %s2226_s12 = smov %s1510_s13 }
 0x301   : > { %s2227_s13 = smov %s1595_s19  ;;  %s2228_s14 = smov %s1587_s16 }
 0x302   :  { %12 = sbr.rel (!%p10_p2) target bundleno = 2 (0x2), region = 144 }

</bundles_post_ra>
